<compile_context>
chip_gen: v5e
topology: v5e:2x2
jax: 0.10.0
libtpu: 0.0.40
codegen_flags: <defaults>
</compile_context>

<pallas_src>
import functools

import jax
import jax.numpy as jnp
from jax.experimental import pallas as pl
from jax.experimental.pallas import tpu as pltpu

LANE = 128  # vreg lane width: hidden activation widths padded to multiples of this


def _round_up(x, m):
    return (x + m - 1) // m * m


def _cdiv(a, b):
    return (a + b - 1) // b


def _sublane_pack(dtype):
    """Sublane packing granularity for a dtype: 8 (f32), 16 (bf16), 32 (int8/fp8)."""
    return 8 * (4 // jnp.dtype(dtype).itemsize)


# ---------------------------------------------------------------------------
# Kernel
# ---------------------------------------------------------------------------
def dqn_mlp_kernel(x_ref, w1_ref, b1_ref, w2_ref, b2_ref, w3_ref, b3_ref, out_ref,
                   *, compute_dtype):
    """One batch tile: relu(x@W1+b1) -> relu(.@W2+b2) -> .@W3+b3 (f32 accumulation)."""
    x = x_ref[...].astype(compute_dtype)  # no-op: x already arrives in compute dtype

    h1 = jnp.dot(x, w1_ref[...], preferred_element_type=jnp.float32) + b1_ref[...]
    h1 = jnp.maximum(h1, 0.0).astype(compute_dtype)   # bias + ReLU in f32, cast after

    h2 = jnp.dot(h1, w2_ref[...], preferred_element_type=jnp.float32) + b2_ref[...]
    h2 = jnp.maximum(h2, 0.0).astype(compute_dtype)

    actions = jnp.dot(h2, w3_ref[...], preferred_element_type=jnp.float32) + b3_ref[...]
    out_ref[...] = actions.astype(out_ref.dtype)


# ---------------------------------------------------------------------------
# Param preparation (done ONCE, outside the hot path)
# ---------------------------------------------------------------------------
def prepare_dqn_params(params, compute_dtype=jnp.bfloat16):
    """Transpose PyTorch-style [out, in] weights to [in, out], pad hidden widths to 128
    lanes, pad W1's K only to the sublane packing, keep W3's N at num_actions, and cast
    weights once to the MXU compute dtype. Biases stay f32."""
    pack = _sublane_pack(compute_dtype)

    def prep(w, b, k_pad, n_pad):
        out_f, in_f = w.shape
        in_p = _round_up(in_f, k_pad)
        out_p = _round_up(out_f, n_pad)
        wt = jnp.zeros((in_p, out_p), compute_dtype)
        wt = wt.at[:in_f, :out_f].set(w.T.astype(compute_dtype))
        bp = jnp.zeros((1, out_p), jnp.float32)
        bp = bp.at[0, :out_f].set(b.astype(jnp.float32))
        return wt, bp

    w1, b1 = prep(params["w1"], params["b1"], k_pad=pack, n_pad=LANE)  # K: sublane only
    w2, b2 = prep(params["w2"], params["b2"], k_pad=LANE, n_pad=LANE)  # K matches h1 width
    w3, b3 = prep(params["w3"], params["b3"], k_pad=LANE, n_pad=1)     # N: num_actions
    return {
        "w1": w1, "b1": b1, "w2": w2, "b2": b2, "w3": w3, "b3": b3,
        "input_dims": int(params["w1"].shape[1]),
        "num_actions": int(params["w3"].shape[0]),
        "compute_dtype": compute_dtype,
    }


# ---------------------------------------------------------------------------
# Forward wrapper
# ---------------------------------------------------------------------------
def dqn_forward(state, prep, *, block_b=1024):
    """state: [B, input_dims]. Returns Q-values [B, num_actions] float32."""
    w1, b1 = prep["w1"], prep["b1"]
    w2, b2 = prep["w2"], prep["b2"]
    w3, b3 = prep["w3"], prep["b3"]
    compute_dtype = prep["compute_dtype"]

    B, D = state.shape
    Dk, H1p = w1.shape
    H2p = w2.shape[1]
    A = w3.shape[1]            # == num_actions (unpadded output lanes)

    sub = _sublane_pack(compute_dtype)

    # One-time cast to the MXU compute dtype (halves x DMA bytes for bf16). Only if
    # input_dims is not already a multiple of the sublane packing, a tiny pad to Dk
    # (e.g. 10 -> 16) -- never to 128.
    x = state if state.dtype == jnp.dtype(compute_dtype) else state.astype(compute_dtype)
    if D != Dk:
        x = jnp.pad(x, ((0, 0), (0, Dk - D)))

    # Batch tile: sublane-aligned, capped by block_b, and capped at ~B/2 so the parallel
    # batch axis puts work on both TensorCores on v7x. Ragged last block is fine.
    TB = min(int(block_b), _round_up(_cdiv(B, 2), sub))
    TB = max(_round_up(TB, sub), sub)
    grid = (_cdiv(B, TB),)

    flops = int(2 * B * (Dk * H1p + H1p * H2p + H2p * A))
    bytes_accessed = int(
        x.size * x.dtype.itemsize + B * A * 4
        + w1.nbytes + b1.nbytes + w2.nbytes + b2.nbytes + w3.nbytes + b3.nbytes
    )

    kernel = functools.partial(dqn_mlp_kernel, compute_dtype=compute_dtype)

    return pl.pallas_call(
        kernel,
        out_shape=jax.ShapeDtypeStruct((B, A), jnp.float32),
        grid=grid,
        in_specs=[
            pl.BlockSpec((TB, Dk), lambda i: (i, 0)),     # x: streamed over batch
            pl.BlockSpec((Dk, H1p), lambda i: (0, 0)),    # W1: resident (fetched once)
            pl.BlockSpec((1, H1p), lambda i: (0, 0)),     # b1: resident
            pl.BlockSpec((H1p, H2p), lambda i: (0, 0)),   # W2: resident
            pl.BlockSpec((1, H2p), lambda i: (0, 0)),     # b2: resident
            pl.BlockSpec((H2p, A), lambda i: (0, 0)),     # W3: resident (N = num_actions)
            pl.BlockSpec((1, A), lambda i: (0, 0)),       # b3: resident
        ],
        out_specs=pl.BlockSpec((TB, A), lambda i: (i, 0)),
        compiler_params=pltpu.CompilerParams(
            dimension_semantics=("parallel",),            # 2-TC sharding on v7x
            vmem_limit_bytes=32 * 1024 * 1024,
        ),
        cost_estimate=pl.CostEstimate(
            flops=flops, transcendentals=0, bytes_accessed=bytes_accessed),
    )(x, w1, b1, w2, b2, w3, b3)


# ---------------------------------------------------------------------------
# Init (matches nn.Linear default init) + references
# ---------------------------------------------------------------------------
def init_linear_params(key, in_features, out_features):
    kw, kb = jax.random.split(key)
    bound = 1.0 / jnp.sqrt(jnp.float32(in_features))
    w = jax.random.uniform(kw, (out_features, in_features), jnp.float32, -bound, bound)
    b = jax.random.uniform(kb, (out_features,), jnp.float32, -bound, bound)
    return w, b


def make_dqn_params(key, input_dims, fc1_dims, fc2_dims, num_actions):
    k1, k2, k3 = jax.random.split(key, 3)
    w1, b1 = init_linear_params(k1, input_dims, fc1_dims)
    w2, b2 = init_linear_params(k2, fc1_dims, fc2_dims)
    w3, b3 = init_linear_params(k3, fc2_dims, num_actions)
    return {"w1": w1, "b1": b1, "w2": w2, "b2": b2, "w3": w3, "b3": b3}


def dqn_reference(state, params):
    """Pure-JAX fp32 reference matching the PyTorch forward."""
    h1 = jnp.maximum(state @ params["w1"].T + params["b1"], 0.0)
    h2 = jnp.maximum(h1 @ params["w2"].T + params["b2"], 0.0)
    return h2 @ params["w3"].T + params["b3"]


def dqn_reference_prepared(state, prep):
    """Reference using the same padded / cast weights as the kernel (for bf16 check)."""
    c = prep["compute_dtype"]
    Dk = prep["w1"].shape[0]
    x = state.astype(c)
    if x.shape[1] != Dk:
        x = jnp.pad(x, ((0, 0), (0, Dk - x.shape[1])))
    h1 = jnp.maximum(
        jnp.dot(x, prep["w1"], preferred_element_type=jnp.float32) + prep["b1"], 0.0)
    h2 = jnp.maximum(
        jnp.dot(h1.astype(c), prep["w2"], preferred_element_type=jnp.float32) + prep["b2"], 0.0)
    return jnp.dot(h2.astype(c), prep["w3"], preferred_element_type=jnp.float32) + prep["b3"]


# TODO(synk): Adam optimizer, MSELoss and device placement from the PyTorch module are
# training machinery, not part of the forward pass, and are not translated here.

if __name__ == "__main__":
    input_dims, fc1_dims, fc2_dims, num_actions = 16, 32, 32, 4

    key = jax.random.PRNGKey(0)
    k_params, k_state1, k_state2 = jax.random.split(key, 3)
    params = make_dqn_params(k_params, input_dims, fc1_dims, fc2_dims, num_actions)

    # --- exact fp32 path, tiny batch (single ragged block: B=4 < TB=8) ---------------
    prep_f32 = prepare_dqn_params(params, compute_dtype=jnp.float32)
    state_small = jax.random.normal(k_state1, (4, input_dims), dtype=jnp.float32)
    out_small = jax.block_until_ready(dqn_forward(state_small, prep_f32))
    ref_small = dqn_reference(state_small, params)
    assert out_small.shape == (4, num_actions)
    assert jnp.allclose(out_small, ref_small, atol=1e-5, rtol=1e-5)

    # --- fp32 path, batch not a multiple of the tile (multi-step grid, ragged tail) --
    state_big = jax.random.normal(k_state2, (300, input_dims), dtype=jnp.float32)
    out_big = jax.block_until_ready(dqn_forward(state_big, prep_f32, block_b=128))
    ref_big = dqn_reference(state_big, params)
    assert out_big.shape == (300, num_actions)
    assert jnp.allclose(out_big, ref_big, atol=1e-5, rtol=1e-5)

    # --- default bf16 MXU path (f32 accumulation), 2-way grid split (v7x megacore) ---
    prep_bf16 = prepare_dqn_params(params)                 # compute_dtype defaults to bf16
    out_bf16 = jax.block_until_ready(dqn_forward(state_big, prep_bf16))
    ref_bf16 = dqn_reference_prepared(state_big, prep_bf16)
    assert out_bf16.shape == (300, num_actions)
    assert jnp.allclose(out_bf16, ref_bf16, atol=1e-3, rtol=1e-3)
    assert jnp.allclose(out_bf16, ref_big, atol=1e-1, rtol=1e-1)  # sanity vs fp32 reference

    print("KERNEL_OK")
</pallas_src>

<mosaic_0001>
module attributes {stable_mosaic.version = 11 : i64} {
  func.func @dqn_mlp_kernel(%arg0: i32, %arg1: memref<8x16xf32, #tpu.memory_space<vmem>>, %arg2: memref<16x128xf32, #tpu.memory_space<vmem>>, %arg3: memref<1x128xf32, #tpu.memory_space<vmem>>, %arg4: memref<128x128xf32, #tpu.memory_space<vmem>>, %arg5: memref<1x128xf32, #tpu.memory_space<vmem>>, %arg6: memref<128x4xf32, #tpu.memory_space<vmem>>, %arg7: memref<1x4xf32, #tpu.memory_space<vmem>>, %arg8: memref<8x4xf32, #tpu.memory_space<vmem>>) attributes {dimension_semantics = [#tpu.dimension_semantics<parallel>], iteration_bounds = array<i64: 1>, scalar_prefetch = 0 : i64, scratch_operands = 0 : i64, tpu.core_type = #tpu.core_type<tc>, window_params = [{transform_indices = @transform_0, window_bounds = array<i64: 8, 16>}, {pipeline_mode = #tpu.pipeline_mode<synchronous>, transform_indices = @transform_1, window_bounds = array<i64: 16, 128>}, {pipeline_mode = #tpu.pipeline_mode<synchronous>, transform_indices = @transform_2, window_bounds = array<i64: 1, 128>}, {pipeline_mode = #tpu.pipeline_mode<synchronous>, transform_indices = @transform_3, window_bounds = array<i64: 128, 128>}, {pipeline_mode = #tpu.pipeline_mode<synchronous>, transform_indices = @transform_4, window_bounds = array<i64: 1, 128>}, {pipeline_mode = #tpu.pipeline_mode<synchronous>, transform_indices = @transform_5, window_bounds = array<i64: 128, 4>}, {pipeline_mode = #tpu.pipeline_mode<synchronous>, transform_indices = @transform_6, window_bounds = array<i64: 1, 4>}, {transform_indices = @transform_7, window_bounds = array<i64: 8, 4>}]} {
    %c0 = arith.constant 0 : index
    %c0_0 = arith.constant 0 : index
    %0 = vector.load %arg1[%c0, %c0_0] : memref<8x16xf32, #tpu.memory_space<vmem>>, vector<8x16xf32>
    %c0_1 = arith.constant 0 : index
    %c0_2 = arith.constant 0 : index
    %1 = vector.load %arg2[%c0_1, %c0_2] : memref<16x128xf32, #tpu.memory_space<vmem>>, vector<16x128xf32>
    %cst = arith.constant dense<0.000000e+00> : vector<8x128xf32>
    %2 = tpu.matmul %0, %1, %cst {dimension_numbers = #tpu.dot_dimension_numbers<[1], [0], [0], [1], [0, 0, 1, 1], [], []>} : vector<8x16xf32>, vector<16x128xf32>, vector<8x128xf32> -> vector<8x128xf32>
    %c0_3 = arith.constant 0 : index
    %c0_4 = arith.constant 0 : index
    %3 = vector.load %arg3[%c0_3, %c0_4] : memref<1x128xf32, #tpu.memory_space<vmem>>, vector<1x128xf32>
    %4 = vector.broadcast %3 : vector<1x128xf32> to vector<8x128xf32>
    %5 = arith.addf %2, %4 : vector<8x128xf32>
    %cst_5 = arith.constant 0.000000e+00 : f32
    %6 = vector.broadcast %cst_5 : f32 to vector<8x128xf32>
    %7 = arith.maximumf %5, %6 : vector<8x128xf32>
    %c0_6 = arith.constant 0 : index
    %c0_7 = arith.constant 0 : index
    %8 = vector.load %arg4[%c0_6, %c0_7] : memref<128x128xf32, #tpu.memory_space<vmem>>, vector<128x128xf32>
    %cst_8 = arith.constant dense<0.000000e+00> : vector<8x128xf32>
    %9 = tpu.matmul %7, %8, %cst_8 {dimension_numbers = #tpu.dot_dimension_numbers<[1], [0], [0], [1], [0, 0, 1, 1], [], []>} : vector<8x128xf32>, vector<128x128xf32>, vector<8x128xf32> -> vector<8x128xf32>
    %c0_9 = arith.constant 0 : index
    %c0_10 = arith.constant 0 : index
    %10 = vector.load %arg5[%c0_9, %c0_10] : memref<1x128xf32, #tpu.memory_space<vmem>>, vector<1x128xf32>
    %11 = vector.broadcast %10 : vector<1x128xf32> to vector<8x128xf32>
    %12 = arith.addf %9, %11 : vector<8x128xf32>
    %cst_11 = arith.constant 0.000000e+00 : f32
    %13 = vector.broadcast %cst_11 : f32 to vector<8x128xf32>
    %14 = arith.maximumf %12, %13 : vector<8x128xf32>
    %c0_12 = arith.constant 0 : index
    %c0_13 = arith.constant 0 : index
    %15 = vector.load %arg6[%c0_12, %c0_13] : memref<128x4xf32, #tpu.memory_space<vmem>>, vector<128x4xf32>
    %cst_14 = arith.constant dense<0.000000e+00> : vector<8x4xf32>
    %16 = tpu.matmul %14, %15, %cst_14 {dimension_numbers = #tpu.dot_dimension_numbers<[1], [0], [0], [1], [0, 0, 1, 1], [], []>} : vector<8x128xf32>, vector<128x4xf32>, vector<8x4xf32> -> vector<8x4xf32>
    %c0_15 = arith.constant 0 : index
    %c0_16 = arith.constant 0 : index
    %17 = vector.load %arg7[%c0_15, %c0_16] : memref<1x4xf32, #tpu.memory_space<vmem>>, vector<1x4xf32>
    %18 = vector.broadcast %17 : vector<1x4xf32> to vector<8x4xf32>
    %19 = arith.addf %16, %18 : vector<8x4xf32>
    %c0_17 = arith.constant 0 : index
    %c0_18 = arith.constant 0 : index
    %20 = vector.load %arg8[%c0_17, %c0_18] : memref<8x4xf32, #tpu.memory_space<vmem>>, vector<8x4xf32>
    tpu.vector_store %arg8[%c0_17, %c0_18], %19 {strides = array<i32>} : memref<8x4xf32, #tpu.memory_space<vmem>>, vector<8x4xf32>,
    return
  }
  func.func @transform_0(%arg0: i32) -> (i32, i32) {
    %c0_i32 = arith.constant 0 : i32
    %c0_i32_0 = arith.constant 0 : i32
    return %arg0, %c0_i32 : i32, i32
  }
  func.func @transform_1(%arg0: i32) -> (i32, i32) {
    %c0_i32 = arith.constant 0 : i32
    %c0_i32_0 = arith.constant 0 : i32
    %c0_i32_1 = arith.constant 0 : i32
    return %c0_i32, %c0_i32_0 : i32, i32
  }
  func.func @transform_2(%arg0: i32) -> (i32, i32) {
    %c0_i32 = arith.constant 0 : i32
    %c0_i32_0 = arith.constant 0 : i32
    %c0_i32_1 = arith.constant 0 : i32
    return %c0_i32, %c0_i32_0 : i32, i32
  }
  func.func @transform_3(%arg0: i32) -> (i32, i32) {
    %c0_i32 = arith.constant 0 : i32
    %c0_i32_0 = arith.constant 0 : i32
    %c0_i32_1 = arith.constant 0 : i32
    return %c0_i32, %c0_i32_0 : i32, i32
  }
  func.func @transform_4(%arg0: i32) -> (i32, i32) {
    %c0_i32 = arith.constant 0 : i32
    %c0_i32_0 = arith.constant 0 : i32
    %c0_i32_1 = arith.constant 0 : i32
    return %c0_i32, %c0_i32_0 : i32, i32
  }
  func.func @transform_5(%arg0: i32) -> (i32, i32) {
    %c0_i32 = arith.constant 0 : i32
    %c0_i32_0 = arith.constant 0 : i32
    %c0_i32_1 = arith.constant 0 : i32
    return %c0_i32, %c0_i32_0 : i32, i32
  }
  func.func @transform_6(%arg0: i32) -> (i32, i32) {
    %c0_i32 = arith.constant 0 : i32
    %c0_i32_0 = arith.constant 0 : i32
    %c0_i32_1 = arith.constant 0 : i32
    return %c0_i32, %c0_i32_0 : i32, i32
  }
  func.func @transform_7(%arg0: i32) -> (i32, i32) {
    %c0_i32 = arith.constant 0 : i32
    %c0_i32_0 = arith.constant 0 : i32
    return %arg0, %c0_i32 : i32, i32
  }
}

</mosaic_0001>

<bundles_post_ra>
// kernel: tpu_custom_call.1
= control target key start
LH: loop header
LB: loop body
LE: loop exit
PB: predicated region body
PF: predicated region fallthrough
CT: control target
= control target key end

     0   :  { %12 = vsyncpa [#allocation3], 0  ;;  %s481_s0 = inlined_call_operand.vmem [shape: f32[4,16], index: 0, kind: input, shape index: {}]   ;;  %s482_s1 = inlined_call_operand.hbm [shape: f32[16,128], index: 1, kind: input, shape index: {}]   ;;  %s483_s2 = inlined_call_operand.hbm [shape: f32[1,128], index: 2, kind: input, shape index: {}]   ;;  %s484_s3 = inlined_call_operand.vmem [shape: f32[128,128], index: 3, kind: input, shape index: {}]   ;;  %s485_s4 = inlined_call_operand.hbm [shape: f32[1,128], index: 4, kind: input, shape index: {}]   ;;  %s486_s5 = inlined_call_operand.vmem [shape: f32[128,4], index: 5, kind: input, shape index: {}]   ;;  %s487_s6 = inlined_call_operand.vmem [shape: f32[1,4], index: 6, kind: input, shape index: {}]   ;;  %s488_s7 = inlined_call_operand.hbm [shape: f32[4,4], index: 7, kind: output, shape index: {}]  }
   0x1   :  { %13 = vsyncpa [#allocation6], 0  ;;  %s35_s26 = sshll.u32 %s483_s2, 4  ;;  %s36_s26 = int_to_ptr.hbm [resolvable:$true] %s35_s26 }
   0x2   :  { %14 = vsyncpa [#allocation4], 0  ;;  %s319_s27 = smov [#allocation5]   ;;  %s21_s8 = sshll.u32 %s482_s1, 4  ;;  %s22_s8 = int_to_ptr.hbm [resolvable:$true] %s21_s8 }
   0x3   :  { %s37_s28 = sshll.u32 %s319_s27, 4  ;;  %s320_s9 = smov [#allocation2]   ;;  %s38_s28 = int_to_ptr.vmem [resolvable:$true] %s37_s28 }
   0x4   :  { %40 = dma.hbm_to_vmem [thread:$0]  %s36_s26, 16, %s38_s28, [#allocation6]  }
   0x5   :  { %s23_s10 = sshll.u32 %s320_s9, 4  ;;  %s321_s11 = smov 128   ;;  %s24_s10 = int_to_ptr.vmem [resolvable:$true] %s23_s10 }
   0x6   :  { %s322_s12 = smov 8   ;;  %s48_s2 = sshll.u32 %s485_s4, 4  ;;  %s49_s2 = int_to_ptr.hbm [resolvable:$true] %s48_s2 }
   0x7   :  { %29 = dma.hbm_to_vmem [thread:$0]  %s22_s8, 256, %s24_s10, [#allocation3], %s321_s11, %s321_s11, %s322_s12  }
   0x8   :  { %s323_s15 = smov [#allocation7]  }
   0x9   :  { %s50_s16 = sshll.u32 %s323_s15, 4  ;;  %s51_s16 = int_to_ptr.vmem [resolvable:$true] %s50_s16 }
   0xa   :  { %53 = dma.hbm_to_vmem [thread:$0]  %s49_s2, 16, %s51_s16, [#allocation6]  }
   0xb   :  { %313 = dma.done.wait [#allocation3], 256  }
   0xc   :  { %314 = vsyncadd [#allocation3], 4294967040 }
   0xd   :  { %315 = dma.done.wait [#allocation6], 32  }
   0xe   :  { %316 = vsyncadd [#allocation6], 4294967264  ;;  %v72_v0 = vld [vmem:[#allocation2 + $0x8] sm:$0xff]  ;;  %v71_v1 = vld [vmem:[#allocation2] sm:$0xff]  ;;  %vm77_vm0 = vcmask 130048   ;;  %vm183_vm1 = vcmask 31744  }
   0xf   :  { %95 = vmatpush.msra.mxu0 %v72_v0  ;;  %v70_v2 = vld [vmem:[%s481_s0] sm:$0xff]  ;;  %v117_v3 = vld [vmem:[%s484_s3 + $0x78] sm:$0xff]  ;;  %v116_v4 = vld [vmem:[%s484_s3 + $0x70] sm:$0xff] }
  0x10   :  { %122 = vmatpush.msra.mxu1 %v117_v3  ;;  %v115_v5 = vld [vmem:[%s484_s3 + $0x68] sm:$0xff]  ;;  %v114_v6 = vld [vmem:[%s484_s3 + $0x60] sm:$0xff]  ;;  %v113_v7 = vld [vmem:[%s484_s3 + $0x58] sm:$0xff] }
  0x11   :  { %96 = vmatpush.msra.mxu0 %v71_v1  ;;  %v112_v8 = vld [vmem:[%s484_s3 + $0x50] sm:$0xff]  ;;  %v111_v9 = vld [vmem:[%s484_s3 + $0x48] sm:$0xff]  ;;  %v110_v10 = vld [vmem:[%s484_s3 + $0x40] sm:$0xff] }
  0x12   :  { %205 = vmatmul.msk.f32.vlgmr.msra.gmra.mxu0 %vm77_vm0, %v70_v2  ;;  %123 = vmatpush.msra.mxu1 %v116_v4  ;;  %v109_v11 = vld [vmem:[%s484_s3 + $0x38] sm:$0xff]  ;;  %v108_v12 = vld [vmem:[%s484_s3 + $0x30] sm:$0xff]  ;;  %v107_v13 = vld [vmem:[%s484_s3 + $0x28] sm:$0xff] }
  0x13   :  { %v106_v14 = vld [vmem:[%s484_s3 + $0x20] sm:$0xff]  ;;  %v105_v15 = vld [vmem:[%s484_s3 + $0x18] sm:$0xff]  ;;  %v104_v16 = vld [vmem:[%s484_s3 + $0x10] sm:$0xff] }
  0x14   :  { %124 = vmatpush.msra.mxu1 %v115_v5  ;;  %v103_v17 = vld [vmem:[%s484_s3 + $0x8] sm:$0xff]  ;;  %v102_v18 = vld [vmem:[%s484_s3] sm:$0xff]  ;;  %v158_v19 = vld [vmem:[%s486_s5 + $0x78] sm:$0xff] }
  0x15   :  { %v157_v20 = vld [vmem:[%s486_s5 + $0x70] sm:$0xff]  ;;  %163 = vmatpush.msra.mxu2 %v158_v19  ;;  %v156_v21 = vld [vmem:[%s486_s5 + $0x68] sm:$0xff]  ;;  %v155_v22 = vld [vmem:[%s486_s5 + $0x60] sm:$0xff] }
  0x16   :  { %125 = vmatpush.msra.mxu1 %v114_v6  ;;  %v154_v23 = vld [vmem:[%s486_s5 + $0x58] sm:$0xff]  ;;  %v153_v24 = vld [vmem:[%s486_s5 + $0x50] sm:$0xff]  ;;  %v152_v25 = vld [vmem:[%s486_s5 + $0x48] sm:$0xff] }
  0x17   :  { %164 = vmatpush.msra.mxu2 %v157_v20  ;;  %v151_v26 = vld [vmem:[%s486_s5 + $0x40] sm:$0xff]  ;;  %v150_v27 = vld [vmem:[%s486_s5 + $0x38] sm:$0xff]  ;;  %v149_v28 = vld [vmem:[%s486_s5 + $0x30] sm:$0xff] }
  0x18   :  { %126 = vmatpush.msra.mxu1 %v113_v7  ;;  %v148_v29 = vld [vmem:[%s486_s5 + $0x28] sm:$0xff]  ;;  %v147_v30 = vld [vmem:[%s486_s5 + $0x20] sm:$0xff]  ;;  %v146_v31 = vld [vmem:[%s486_s5 + $0x18] sm:$0xff] }
  0x19   :  { %165 = vmatpush.msra.mxu2 %v156_v21  ;;  %v214_v32 = vld [vmem:[#allocation5] ss:$0 sm:$0xff]  ;;  %v144_v37 = vld [vmem:[%s486_s5 + $0x8] sm:$0xff]  ;;  %v143_v38 = vld [vmem:[%s486_s5] sm:$0xff] }
  0x1a   :  { %127 = vmatpush.msra.mxu1 %v112_v8  ;;  %v145_v36 = vld [vmem:[%s486_s5 + $0x10] sm:$0xff]  ;;  %v216_v43 = vld [vmem:[%s487_s6] ss:$0 sm:$0xff] }
  0x1b   :  { %166 = vmatpush.msra.mxu2 %v155_v22  ;;  %v215_v39 = vld [vmem:[#allocation7] ss:$0 sm:$0xff] }
  0x1c   :  { %128 = vmatpush.msra.mxu1 %v111_v9 }
  0x1d   :  { %167 = vmatpush.msra.mxu2 %v154_v23 }
  0x1e   :  { %129 = vmatpush.msra.mxu1 %v110_v10 }
  0x1f   :  { %168 = vmatpush.msra.mxu2 %v153_v24 }
  0x20   :  { %130 = vmatpush.msra.mxu1 %v109_v11 }
  0x21   :  { %169 = vmatpush.msra.mxu2 %v152_v25 }
  0x22   :  { %131 = vmatpush.msra.mxu1 %v108_v12 }
  0x23   :  { %170 = vmatpush.msra.mxu2 %v151_v26 }
  0x24   :  { %132 = vmatpush.msra.mxu1 %v107_v13 }
  0x25   :  { %171 = vmatpush.msra.mxu2 %v150_v27 }
  0x26   :  { %133 = vmatpush.msra.mxu1 %v106_v14 }
  0x27   :  { %172 = vmatpush.msra.mxu2 %v149_v28 }
  0x28   :  { %134 = vmatpush.msra.mxu1 %v105_v15 }
  0x29   :  { %173 = vmatpush.msra.mxu2 %v148_v29 }
  0x2a   :  { %135 = vmatpush.msra.mxu1 %v104_v16 }
  0x2b   :  { %174 = vmatpush.msra.mxu2 %v147_v30 }
  0x2c   :  { %136 = vmatpush.msra.mxu1 %v103_v17 }
  0x2d   :  { %175 = vmatpush.msra.mxu2 %v146_v31 }
  0x2e   :  { %137 = vmatpush.msra.mxu1 %v102_v18 }
  0x2f   :  { %176 = vmatpush.msra.mxu2 %v145_v36 }
  0x31   :  { %177 = vmatpush.msra.mxu2 %v144_v37 }
  0x33   :  { %178 = vmatpush.msra.mxu2 %v143_v38 }
  0x8f   :  { %v98_v33 = vpop.f32.mrf.mxu0 }
  0x90   :  { %v99_v34 = vadd.f32 %v214_v32, %v98_v33 }
  0x92   :  { %v101_v35 = vmax.f32 %v99_v34, 0.0 }
  0x94   :  { %138 = vmatmul.f32.vlgmr.msra.gmra.mxu1 %v101_v35 }
 0x111   :  { %v139_v40 = vpop.f32.mrf.mxu1 }
 0x112   :  { %v140_v41 = vadd.f32 %v215_v39, %v139_v40 }
 0x114   :  { %v142_v42 = vmax.f32 %v140_v41, 0.0 }
 0x116   :  { %179 = vmatmul.f32.vlgmr.msra.gmra.mxu2 %v142_v42 }
 0x199   :  { %v180_v44 = vpop.f32.mrf.mxu2 }
 0x19a   :  { %v181_v45 = vadd.f32 %v216_v43, %v180_v44 }
 0x19c   :  { %184 = vst.msk [vmem:[#allocation8] sm:$0xff] %vm183_vm1, %v181_v45 }
 0x19d   :  { %188 = vsyncadd [#allocation4], 64  ;;  %s191_s3 = sshll.u32 %s488_s7, 4  ;;  %s324_s5 = smov [#allocation8]   ;;  %s192_s3 = int_to_ptr.hbm [resolvable:$true] %s191_s3 }
 0x19e   :  { %s189_s29 = sshll.u32 %s324_s5, 4  ;;  %s325_s30 = smov 64   ;;  %s190_s29 = int_to_ptr.vmem [resolvable:$true] %s189_s29 }
 0x19f   :  { %s326_s8 = smov 4  }
 0x1a0   :  { %197 = dma.vmem_to_hbm [thread:$0]  %s190_s29, 64, %s192_s3, [#allocation4], %s325_s30, %s325_s30, %s326_s8  }
 0x1a1   :  { %317 = dma.done.wait [#allocation4], 128  }
 0x1a2   :  { %318 = vsyncadd [#allocation4], 4294967168 }
 0x1a3   :  { %202 = vsyncpa [#allocation3], 1 }
 0x1a4   :  { %203 = vsyncpa [#allocation6], 1 }
 0x1a5   :  { %204 = vsyncpa [#allocation4], 1 }

</bundles_post_ra>
